<compile_context>
chip_gen: v5e
topology: v5e:2x2
jax: 0.10.0
libtpu: 0.0.40
codegen_flags: <defaults>
</compile_context>

<pallas_src>
import functools

import jax
import jax.numpy as jnp
from jax.experimental import pallas as pl
from jax.experimental.pallas import tpu as pltpu


def _pick_channel_block(nc, bytes_per_channel, budget_bytes=4 * 1024 * 1024):
    """Largest divisor of nc whose per-step (in + out) block fits the budget."""
    best = 1
    for bc in range(1, nc + 1):
        if nc % bc == 0 and bc * bytes_per_channel <= budget_bytes:
            best = bc
    return best


def _pad_hw_kernel(x_ref, o_ref, *, H, W, hT, hB, wL, wR):
    # x_ref: (Bc, H, W)  input D-slab (already D-wrapped via index_map)
    # o_ref: (Bc, Ho, Wo) output D-slab
    x = x_ref[...]

    # Core block.
    o_ref[:, hT:hT + H, wL:wL + W] = x
    # W halos on the core rows.
    if wL > 0:
        o_ref[:, hT:hT + H, 0:wL] = x[:, :, W - wL:W]
    if wR > 0:
        o_ref[:, hT:hT + H, wL + W:wL + W + wR] = x[:, :, 0:wR]
    # Top H halo (wraps from the bottom of the input), full output width.
    if hT > 0:
        top = x[:, H - hT:H, :]
        o_ref[:, 0:hT, wL:wL + W] = top
        if wL > 0:
            o_ref[:, 0:hT, 0:wL] = top[:, :, W - wL:W]
        if wR > 0:
            o_ref[:, 0:hT, wL + W:wL + W + wR] = top[:, :, 0:wR]
    # Bottom H halo (wraps from the top of the input), full output width.
    if hB > 0:
        bot = x[:, 0:hB, :]
        o_ref[:, hT + H:hT + H + hB, wL:wL + W] = bot
        if wL > 0:
            o_ref[:, hT + H:hT + H + hB, 0:wL] = bot[:, :, W - wL:W]
        if wR > 0:
            o_ref[:, hT + H:hT + H + hB, wL + W:wL + W + wR] = bot[:, :, 0:wR]


def _copy_kernel(x_ref, o_ref):
    o_ref[...] = x_ref[...]


def circular_pad3d(x, padding=(0, 0, 0, 0, 0, 0)):
    """Equivalent of F.pad(x, padding, mode='circular') for 5-D NCDHW input."""
    assert x.ndim == 5, "expected 5-D NCDHW input"
    N, C, D, H, W = x.shape
    wL, wR, hT, hB, dF, dB = padding
    assert all(p >= 0 for p in padding), "negative (cropping) pads unsupported"
    # PyTorch circular mode requires pad <= dim size.
    assert wL <= W and wR <= W and hT <= H and hB <= H and dF <= D and dB <= D

    Do, Ho, Wo = D + dF + dB, H + hT + hB, W + wL + wR
    NC = N * C
    itemsize = jnp.dtype(x.dtype).itemsize

    # D wrap handled purely by DMA addressing: output-D index od reads input
    # D slab (od - dF) mod D.  Written with a nonnegative numerator.
    def in_d(od):
        return (od + (D - dF)) % D

    if hT == 0 and hB == 0 and wL == 0 and wR == 0:
        # Fast path: D-only padding → pure gather-copy with a lane-dense
        # last dimension (H*W folded into lanes).
        HW = H * W
        x_flat = x.reshape(NC, D, 1, HW)
        bc = _pick_channel_block(NC, 2 * HW * itemsize)
        out = pl.pallas_call(
            _copy_kernel,
            out_shape=jax.ShapeDtypeStruct((NC, Do, 1, HW), x.dtype),
            grid_spec=pltpu.PrefetchScalarGridSpec(
                num_scalar_prefetch=0,
                grid=(NC // bc, Do),
                in_specs=[pl.BlockSpec((bc, None, 1, HW),
                                       lambda ci, od: (ci, in_d(od), 0, 0))],
                out_specs=pl.BlockSpec((bc, None, 1, HW),
                                       lambda ci, od: (ci, od, 0, 0)),
            ),
            compiler_params=pltpu.CompilerParams(
                dimension_semantics=("parallel", "parallel")),
        )(x_flat)
        return out.reshape(N, C, Do, H, W)

    # General path: per grid step, one (Bc-channel, single-D) slab is read
    # (D-wrapped via index_map) and the padded H/W slab is written in pieces.
    # TODO(synk): when W << 128 and H/W pads are nonzero the lane dim stays
    # narrow; a fully lane-dense repacking of the padded output is not done.
    x_flat = x.reshape(NC, D, H, W)
    bc = _pick_channel_block(NC, (H * W + Ho * Wo) * itemsize)

    kernel = functools.partial(_pad_hw_kernel, H=H, W=W,
                               hT=hT, hB=hB, wL=wL, wR=wR)
    out = pl.pallas_call(
        kernel,
        out_shape=jax.ShapeDtypeStruct((NC, Do, Ho, Wo), x.dtype),
        grid_spec=pltpu.PrefetchScalarGridSpec(
            num_scalar_prefetch=0,
            grid=(NC // bc, Do),
            in_specs=[pl.BlockSpec((bc, None, H, W),
                                   lambda ci, od: (ci, in_d(od), 0, 0))],
            out_specs=pl.BlockSpec((bc, None, Ho, Wo),
                                   lambda ci, od: (ci, od, 0, 0)),
        ),
        compiler_params=pltpu.CompilerParams(
            dimension_semantics=("parallel", "parallel")),
    )(x_flat)
    return out.reshape(N, C, Do, Ho, Wo)


if __name__ == "__main__":
    key = jax.random.PRNGKey(0)
    N, C, D, H, W = 2, 3, 4, 6, 8
    x = jax.random.normal(key, (N, C, D, H, W), dtype=jnp.float32)

    # General path: circular pad on all three spatial dims.
    padding = (1, 2, 2, 1, 1, 1)  # (wL, wR, hT, hB, dF, dB)
    y = jax.block_until_ready(circular_pad3d(x, padding))
    wL, wR, hT, hB, dF, dB = padding
    y_ref = jnp.pad(x, ((0, 0), (0, 0), (dF, dB), (hT, hB), (wL, wR)),
                    mode="wrap")
    assert y.shape == y_ref.shape, (y.shape, y_ref.shape)
    assert jnp.allclose(y, y_ref), "mismatch vs reference circular pad (general)"

    # Fast path: D-only padding (lane-dense copy path).
    padding2 = (0, 0, 0, 0, 2, 1)
    y2 = jax.block_until_ready(circular_pad3d(x, padding2))
    y2_ref = jnp.pad(x, ((0, 0), (0, 0), (2, 1), (0, 0), (0, 0)), mode="wrap")
    assert y2.shape == y2_ref.shape, (y2.shape, y2_ref.shape)
    assert jnp.allclose(y2, y2_ref), "mismatch vs reference circular pad (D-only)"

    print("KERNEL_OK")
</pallas_src>

<mosaic_0001>
module attributes {stable_mosaic.version = 11 : i64} {
  func.func @_pad_hw_kernel(%arg0: i32, %arg1: i32, %arg2: memref<6x1x6x8xf32, #tpu.memory_space<vmem>>, %arg3: memref<6x1x9x11xf32, #tpu.memory_space<vmem>>) attributes {dimension_semantics = [#tpu.dimension_semantics<parallel>, #tpu.dimension_semantics<parallel>], iteration_bounds = array<i64: 1, 6>, scalar_prefetch = 0 : i64, scratch_operands = 0 : i64, tpu.core_type = #tpu.core_type<tc>, window_params = [{transform_indices = @transform_0, window_bounds = array<i64: 6, 1, 6, 8>}, {transform_indices = @transform_1, window_bounds = array<i64: 6, 1, 9, 11>}]} {
    %c0 = arith.constant 0 : index
    %c0_0 = arith.constant 0 : index
    %c0_1 = arith.constant 0 : index
    %c0_2 = arith.constant 0 : index
    %0 = vector.load %arg2[%c0, %c0_0, %c0_1, %c0_2] : memref<6x1x6x8xf32, #tpu.memory_space<vmem>>, vector<6x1x6x8xf32>
    %1 = vector.shape_cast %0 : vector<6x1x6x8xf32> to vector<6x6x8xf32>
    %c0_3 = arith.constant 0 : index
    %c0_4 = arith.constant 0 : index
    %c2 = arith.constant 2 : index
    %c1 = arith.constant 1 : index
    %2 = vector.load %arg3[%c0_3, %c0_4, %c2, %c1] : memref<6x1x9x11xf32, #tpu.memory_space<vmem>>, vector<6x1x6x8xf32>
    %3 = vector.shape_cast %2 : vector<6x1x6x8xf32> to vector<6x6x8xf32>
    %4 = vector.shape_cast %1 : vector<6x6x8xf32> to vector<6x1x6x8xf32>
    tpu.vector_store %arg3[%c0_3, %c0_4, %c2, %c1], %4 {strides = array<i32>} : memref<6x1x9x11xf32, #tpu.memory_space<vmem>>, vector<6x1x6x8xf32>,
    %5 = vector.extract_strided_slice %1 {offsets = [0, 0, 7], sizes = [6, 6, 1], strides = [1, 1, 1]} : vector<6x6x8xf32> to vector<6x6x1xf32>
    %c0_5 = arith.constant 0 : index
    %c0_6 = arith.constant 0 : index
    %c2_7 = arith.constant 2 : index
    %c0_8 = arith.constant 0 : index
    %6 = vector.load %arg3[%c0_5, %c0_6, %c2_7, %c0_8] : memref<6x1x9x11xf32, #tpu.memory_space<vmem>>, vector<6x1x6x1xf32>
    %7 = vector.shape_cast %6 : vector<6x1x6x1xf32> to vector<6x6x1xf32>
    %8 = vector.shape_cast %5 : vector<6x6x1xf32> to vector<6x1x6x1xf32>
    tpu.vector_store %arg3[%c0_5, %c0_6, %c2_7, %c0_8], %8 {strides = array<i32>} : memref<6x1x9x11xf32, #tpu.memory_space<vmem>>, vector<6x1x6x1xf32>,
    %9 = vector.extract_strided_slice %1 {offsets = [0, 0, 0], sizes = [6, 6, 2], strides = [1, 1, 1]} : vector<6x6x8xf32> to vector<6x6x2xf32>
    %c0_9 = arith.constant 0 : index
    %c0_10 = arith.constant 0 : index
    %c2_11 = arith.constant 2 : index
    %c9 = arith.constant 9 : index
    %10 = vector.load %arg3[%c0_9, %c0_10, %c2_11, %c9] : memref<6x1x9x11xf32, #tpu.memory_space<vmem>>, vector<6x1x6x2xf32>
    %11 = vector.shape_cast %10 : vector<6x1x6x2xf32> to vector<6x6x2xf32>
    %12 = vector.shape_cast %9 : vector<6x6x2xf32> to vector<6x1x6x2xf32>
    tpu.vector_store %arg3[%c0_9, %c0_10, %c2_11, %c9], %12 {strides = array<i32>} : memref<6x1x9x11xf32, #tpu.memory_space<vmem>>, vector<6x1x6x2xf32>,
    %13 = vector.extract_strided_slice %1 {offsets = [0, 4, 0], sizes = [6, 2, 8], strides = [1, 1, 1]} : vector<6x6x8xf32> to vector<6x2x8xf32>
    %c0_12 = arith.constant 0 : index
    %c0_13 = arith.constant 0 : index
    %c0_14 = arith.constant 0 : index
    %c1_15 = arith.constant 1 : index
    %14 = vector.load %arg3[%c0_12, %c0_13, %c0_14, %c1_15] : memref<6x1x9x11xf32, #tpu.memory_space<vmem>>, vector<6x1x2x8xf32>
    %15 = vector.shape_cast %14 : vector<6x1x2x8xf32> to vector<6x2x8xf32>
    %16 = vector.shape_cast %13 : vector<6x2x8xf32> to vector<6x1x2x8xf32>
    tpu.vector_store %arg3[%c0_12, %c0_13, %c0_14, %c1_15], %16 {strides = array<i32>} : memref<6x1x9x11xf32, #tpu.memory_space<vmem>>, vector<6x1x2x8xf32>,
    %17 = vector.extract_strided_slice %13 {offsets = [0, 0, 7], sizes = [6, 2, 1], strides = [1, 1, 1]} : vector<6x2x8xf32> to vector<6x2x1xf32>
    %c0_16 = arith.constant 0 : index
    %c0_17 = arith.constant 0 : index
    %c0_18 = arith.constant 0 : index
    %c0_19 = arith.constant 0 : index
    %18 = vector.load %arg3[%c0_16, %c0_17, %c0_18, %c0_19] : memref<6x1x9x11xf32, #tpu.memory_space<vmem>>, vector<6x1x2x1xf32>
    %19 = vector.shape_cast %18 : vector<6x1x2x1xf32> to vector<6x2x1xf32>
    %20 = vector.shape_cast %17 : vector<6x2x1xf32> to vector<6x1x2x1xf32>
    tpu.vector_store %arg3[%c0_16, %c0_17, %c0_18, %c0_19], %20 {strides = array<i32>} : memref<6x1x9x11xf32, #tpu.memory_space<vmem>>, vector<6x1x2x1xf32>,
    %21 = vector.extract_strided_slice %13 {offsets = [0, 0, 0], sizes = [6, 2, 2], strides = [1, 1, 1]} : vector<6x2x8xf32> to vector<6x2x2xf32>
    %c0_20 = arith.constant 0 : index
    %c0_21 = arith.constant 0 : index
    %c0_22 = arith.constant 0 : index
    %c9_23 = arith.constant 9 : index
    %22 = vector.load %arg3[%c0_20, %c0_21, %c0_22, %c9_23] : memref<6x1x9x11xf32, #tpu.memory_space<vmem>>, vector<6x1x2x2xf32>
    %23 = vector.shape_cast %22 : vector<6x1x2x2xf32> to vector<6x2x2xf32>
    %24 = vector.shape_cast %21 : vector<6x2x2xf32> to vector<6x1x2x2xf32>
    tpu.vector_store %arg3[%c0_20, %c0_21, %c0_22, %c9_23], %24 {strides = array<i32>} : memref<6x1x9x11xf32, #tpu.memory_space<vmem>>, vector<6x1x2x2xf32>,
    %25 = vector.extract_strided_slice %1 {offsets = [0, 0, 0], sizes = [6, 1, 8], strides = [1, 1, 1]} : vector<6x6x8xf32> to vector<6x1x8xf32>
    %c0_24 = arith.constant 0 : index
    %c0_25 = arith.constant 0 : index
    %c8 = arith.constant 8 : index
    %c1_26 = arith.constant 1 : index
    %26 = vector.load %arg3[%c0_24, %c0_25, %c8, %c1_26] : memref<6x1x9x11xf32, #tpu.memory_space<vmem>>, vector<6x1x1x8xf32>
    %27 = vector.shape_cast %26 : vector<6x1x1x8xf32> to vector<6x1x8xf32>
    %28 = vector.shape_cast %25 : vector<6x1x8xf32> to vector<6x1x1x8xf32>
    tpu.vector_store %arg3[%c0_24, %c0_25, %c8, %c1_26], %28 {strides = array<i32>} : memref<6x1x9x11xf32, #tpu.memory_space<vmem>>, vector<6x1x1x8xf32>,
    %29 = vector.extract_strided_slice %25 {offsets = [0, 0, 7], sizes = [6, 1, 1], strides = [1, 1, 1]} : vector<6x1x8xf32> to vector<6x1x1xf32>
    %c0_27 = arith.constant 0 : index
    %c0_28 = arith.constant 0 : index
    %c8_29 = arith.constant 8 : index
    %c0_30 = arith.constant 0 : index
    %30 = vector.load %arg3[%c0_27, %c0_28, %c8_29, %c0_30] : memref<6x1x9x11xf32, #tpu.memory_space<vmem>>, vector<6x1x1x1xf32>
    %31 = vector.shape_cast %30 : vector<6x1x1x1xf32> to vector<6x1x1xf32>
    %32 = vector.shape_cast %29 : vector<6x1x1xf32> to vector<6x1x1x1xf32>
    tpu.vector_store %arg3[%c0_27, %c0_28, %c8_29, %c0_30], %32 {strides = array<i32>} : memref<6x1x9x11xf32, #tpu.memory_space<vmem>>, vector<6x1x1x1xf32>,
    %33 = vector.extract_strided_slice %25 {offsets = [0, 0, 0], sizes = [6, 1, 2], strides = [1, 1, 1]} : vector<6x1x8xf32> to vector<6x1x2xf32>
    %c0_31 = arith.constant 0 : index
    %c0_32 = arith.constant 0 : index
    %c8_33 = arith.constant 8 : index
    %c9_34 = arith.constant 9 : index
    %34 = vector.load %arg3[%c0_31, %c0_32, %c8_33, %c9_34] : memref<6x1x9x11xf32, #tpu.memory_space<vmem>>, vector<6x1x1x2xf32>
    %35 = vector.shape_cast %34 : vector<6x1x1x2xf32> to vector<6x1x2xf32>
    %36 = vector.shape_cast %33 : vector<6x1x2xf32> to vector<6x1x1x2xf32>
    tpu.vector_store %arg3[%c0_31, %c0_32, %c8_33, %c9_34], %36 {strides = array<i32>} : memref<6x1x9x11xf32, #tpu.memory_space<vmem>>, vector<6x1x1x2xf32>,
    return
  }
  func.func @transform_0(%arg0: i32, %arg1: i32) -> (i32, i32, i32, i32) {
    %c3_i32 = arith.constant 3 : i32
    %0 = arith.addi %arg1, %c3_i32 : i32
    %c4_i32 = arith.constant 4 : i32
    %c0_i32 = arith.constant 0 : i32
    %1 = arith.cmpi eq, %c4_i32, %c0_i32 : i32
    %c1_i32 = arith.constant 1 : i32
    %2 = arith.select %1, %c1_i32, %c4_i32 : i32
    %3 = arith.remsi %0, %2 : i32
    %c0_i32_0 = arith.constant 0 : i32
    %4 = arith.cmpi ne, %3, %c0_i32_0 : i32
    %c0_i32_1 = arith.constant 0 : i32
    %5 = arith.cmpi slt, %3, %c0_i32_1 : i32
    %c0_i32_2 = arith.constant 0 : i32
    %6 = arith.cmpi slt, %2, %c0_i32_2 : i32
    %7 = arith.xori %5, %6 : i1
    %8 = arith.andi %7, %4 : i1
    %9 = arith.addi %3, %2 : i32
    %10 = arith.select %8, %9, %3 : i32
    %c0_i32_3 = arith.constant 0 : i32
    %c0_i32_4 = arith.constant 0 : i32
    %c0_i32_5 = arith.constant 0 : i32
    return %arg0, %10, %c0_i32_3, %c0_i32_4 : i32, i32, i32, i32
  }
  func.func @transform_1(%arg0: i32, %arg1: i32) -> (i32, i32, i32, i32) {
    %c0_i32 = arith.constant 0 : i32
    %c0_i32_0 = arith.constant 0 : i32
    %c0_i32_1 = arith.constant 0 : i32
    return %arg0, %arg1, %c0_i32, %c0_i32_0 : i32, i32, i32, i32
  }
}

</mosaic_0001>

<bundles_post_ra>
// kernel: tpu_custom_call.1
= control target key start
LH: loop header
LB: loop body
LE: loop exit
PB: predicated region body
PF: predicated region fallthrough
CT: control target
= control target key end

     0   :  { %s679_s6 = smov 0   ;;  %s681_s7 = smov 0   ;;  %s903_s0 = inlined_call_operand.vmem [shape: f32[6,4,6,8], index: 0, kind: input, shape index: {}]   ;;  %s904_s1 = inlined_call_operand.vmem [shape: f32[6,6,9,11], index: 1, kind: output, shape index: {}]  }
   0x1   :  { %s683_s8 = smov 0   ;;  %s685_s9 = smov 0  }
   0x2   :  { %s687_s10 = smov 0   ;;  %s689_s11 = smov 0  }
   0x3   :  { %s691_s12 = smov 0  }
   0x4 LB: > { %s20_s13 = sadd.s32 1, %s660_s11  ;;  %s27_s14 = sadd.s32 3, %s660_s11  ;;  %s664_s12 = sphi %s691_s12, %s11_s12   ;;  %s660_s11 = sphi %s689_s11, %s912_s11   ;;  %s656_s10 = sphi %s687_s10, %s911_s10   ;;  %s652_s9 = sphi %s685_s9, %s910_s9   ;;  %s648_s8 = sphi %s683_s8, %s909_s8   ;;  %s644_s7 = sphi %s681_s7, %s908_s7   ;;  %s640_s6 = sphi %s679_s6, %s907_s6  }
   0x5   : > { %p21_p0 = scmp.ge.s32.totalorder %s20_s13, 6  ;;  %s29_s15 = ssub.s32 0, %s27_s14 }
   0x6   : > { %s528_s16 = sadd.s32 4294967295, %s664_s12   ;;  %s530_s17 = smin.u32 %s29_s15, %s27_s14 }
   0x7   : > { %s914_s13 = smov (%p21_p0, %s20_s13), 0  ;;  %s31_s18 = sand.u32 3, %s530_s17  }
   0x8   : > { %s40_s19 = sadd.s32 3, %s914_s13  ;;  %p65_p1 = scmp.ne.s32.totalorder %s652_s9, %s648_s8 }
   0x9   : > { %s42_s20 = ssub.s32 0, %s40_s19  ;;  %p532_p2 = scmp.lt.s32.totalorder %s31_s18, 0 }
   0xa   : > { %s38_s21 = sadd.s32 4, %s31_s18  ;;  %s533_s22 = smin.u32 %s42_s20, %s40_s19 }
   0xb   : > { %p66_p3 = scmp.eq.s32.totalorder %s664_s12, 0  ;;  %s916_s21 = smov (!%p532_p2, %s38_s21), %s31_s18 }
   0xc   : > { %s44_s23 = sand.u32 3, %s533_s22   ;;  %s82_s25 = ssub.s32 %s660_s11, %s914_s13 }
   0xd   : > { %p723_p4 = por %p66_p3, %p65_p1  ;;  %p84_p5 = scmp.eq.s32.totalorder %s82_s25, 0 }
   0xe   : > { %s86_s26 = sadd.s32 1, %s644_s7  ;;  %p535_p6 = scmp.lt.s32.totalorder %s44_s23, 0 }
   0xf   : > { %s51_s27 = sadd.s32 4, %s44_s23  ;;  %p96_p7 = scmp.ne.s32.totalorder %s644_s7, %s640_s6 }
  0x10   : > { %s731_s28 = scalar_select %p84_p5, %s644_s7, %s86_s26  }
  0x11   : > { %s918_s27 = smov (!%p535_p6, %s51_s27), %s44_s23  ;;  %p97_p8 = scmp.eq.s32.totalorder %s528_s16, 5 }
  0x12   : > { %s54_s29 = ssub.s32 %s916_s21, %s918_s27  ;;  %s58_s30 = sadd.s32 1, %s652_s9 }
  0x13   : > { %p56_p9 = scmp.eq.s32.totalorder %s54_s29, 0  ;;  %p736_p10 = por %p97_p8, %p96_p7 }
  0x14   : > { %p537_p11 = scmp.ge.s32.totalorder %s664_s12, 6 }
  0x15   : > { %s741_s3 = scalar_select %p56_p9, %s652_s9, %s58_s30  }
  0x16   : > { %119 = sbr.rel (%p537_p11) target bundleno = 37 (0x25), region = 16 }
  0x1b   : > { %122 = sbr.rel (!%p723_p4) target bundleno = 37 (0x25), region = 20  ;;  %s124_s4 = sand.u32 (%p723_p4), 1, %s652_s9  }
  0x1c   : > { %s541_s5 = sshll.u32 (%p723_p4), %s916_s21, 3  ;;  %s548_s14 = smul.u32 (%p723_p4), 48, %s124_s4 }
  0x1d   : > { %s144_s17 = scalar_lea.vmem (%p723_p4), %s903_s0, %s541_s5 }
  0x1e   : > { %v183_v0 = vld [vmem:[%s144_s17] sm:$0xff] (%p723_p4)  ;;  %s126_s18 = scalar_lea.vmem (%p723_p4), [#allocation2], %s548_s14 }
  0x1f   : > { %v185_v1 = vld [vmem:[%s144_s17 + $0x20] sm:$0xff] (%p723_p4)  ;;  %184 = vst [vmem:[%s126_s18] sm:$0xff] (%p723_p4), %v183_v0 }
  0x20   : > { %v187_v2 = vld [vmem:[%s144_s17 + $0x40] sm:$0xff]  ;;  %186 = vst [vmem:[%s126_s18 + $0x8] sm:$0xff] %v185_v1 }
  0x21   : > { %v189_v3 = vld [vmem:[%s144_s17 + $0x60] sm:$0xff]  ;;  %188 = vst [vmem:[%s126_s18 + $0x10] sm:$0xff] %v187_v2 }
  0x22   : > { %v191_v4 = vld [vmem:[%s144_s17 + $0x80] sm:$0xff]  ;;  %190 = vst [vmem:[%s126_s18 + $0x18] sm:$0xff] %v189_v3 }
  0x23   : > { %v193_v5 = vld [vmem:[%s144_s17 + $0xa0] sm:$0xff]  ;;  %192 = vst [vmem:[%s126_s18 + $0x20] sm:$0xff] %v191_v4 }
  0x24   : > { %194 = vst [vmem:[%s126_s18 + $0x28] sm:$0xff] %v193_v5 }
  0x25 PF: > { %p542_p12 = scmp.ge.s32.totalorder %s664_s12, 1  ;;  %p199_p13 = scmp.lt.s32.totalorder %s664_s12, 7 }
  0x27   : > { %p200_p0 = pnand %p542_p12, %p199_p13 }
  0x28   : > { %s206_s19 = sand.u32 (!%p200_p0), 1, %s648_s8   ;;  %s666_s22 = smov (!%p200_p0), 1  }
  0x29   : > { %203 = sbr.rel (%p200_p0) target bundleno = 222 (0xde), region = 58  ;;  %s667_s23 = smov (!%p200_p0), 121  }
  0x2a   : > { %s549_s20 = smul.u32 (!%p200_p0), 48, %s206_s19  ;;  %s668_s8 = smov (!%p200_p0), 9  }
  0x2b   : > { %s221_s24 = sand.u32 (!%p200_p0), 1, %s640_s6  }
  0x2c   : > { %s208_s21 = scalar_lea.vmem (!%p200_p0), [#allocation2], %s549_s20  ;;  %s550_s25 = smul.u32 (!%p200_p0), 96, %s221_s24 }
  0x2e   : > { %v241_v6 = vld [vmem:[%s208_s21 + $0x10] sm:$0x3f]  ;;  %v239_v7 = vld [vmem:[%s208_s21] sm:$0x3f]  ;;  %v242_v9 = vld [vmem:[%s208_s21 + $0x18] sm:$0x3f] }
  0x2f   : > { %255 = vrot.lane.b32.xlu1 %v241_v6, %s666_s22  ;;  %251 = vrot.lane.b32.xlu0 %v239_v7, %s666_s22  ;;  %v243_v8 = vld [vmem:[%s208_s21 + $0x20] sm:$0x3f]  ;;  %v240_v10 = vld [vmem:[%s208_s21 + $0x8] sm:$0x3f]  ;;  %vm269_vm0 = vcmask 70664   ;;  %vm326_vm1 = vcmask 70668  }
  0x30   : > { %259 = vrot.lane.b32.xlu2 %v243_v8, %s666_s22  ;;  %v244_v11 = vld [vmem:[%s208_s21 + $0x28] sm:$0x3f]  ;;  %vm347_vm2 = vcmask 65544   ;;  %s754_s26 = scalar_lea.vmem [#allocation3], %s550_s25  ;;  %vm294_vm3 = vcmask 5120   ;;  %vm333_vm4 = vcmask 5124  }
  0x31   : > { %vm354_vm5 = vcmask 0   ;;  %vm319_vm6 = vcmask 87112   ;;  %vm340_vm7 = vcmask 87116   ;;  %vm361_vm8 = vcmask 81992   ;;  %s547_s6 = sshll.u32 (%p736_p10), %s656_s10, 4 }
  0x32   : > { %s380_s30 = scalar_lea.vmem (%p736_p10), %s904_s1, %s547_s6 }
  0x37   : > { %257 = vrot.lane.b32.xlu1 %v242_v9, %s666_s22  ;;  %253 = vrot.lane.b32.xlu0 %v240_v10, %s666_s22 }
  0x38   : > { %261 = vrot.lane.b32.xlu2 %v244_v11, %s666_s22 }
  0x3f   : > { %278 = vrot.lane.b32.xlu1 %v240_v10, %s667_s23  ;;  %276 = vrot.lane.b32.xlu0 %v239_v7, %s667_s23 }
  0x40   : > { %280 = vrot.lane.b32.xlu2 %v241_v6, %s667_s23 }
  0x47   : > { %284 = vrot.lane.b32.xlu1 %v243_v8, %s667_s23  ;;  %282 = vrot.lane.b32.xlu0 %v242_v9, %s667_s23 }
  0x48   : > { %286 = vrot.lane.b32.xlu2 %v244_v11, %s667_s23 }
  0x4f   : > { %303 = vrot.lane.b32.xlu1 %v240_v10, %s668_s8  ;;  %301 = vrot.lane.b32.xlu0 %v239_v7, %s668_s8 }
  0x50   : > { %305 = vrot.lane.b32.xlu2 %v241_v6, %s668_s8 }
  0x57   : > { %309 = vrot.lane.b32.xlu1 %v243_v8, %s668_s8  ;;  %307 = vrot.lane.b32.xlu0 %v242_v9, %s668_s8 }
  0x58   : > { %311 = vrot.lane.b32.xlu2 %v244_v11, %s668_s8 }
  0x8a   : > { %v260_v12 = vpop.permute.xlu2 %259 }
  0x8b   : > { %274 = vst.msk [vmem:[%s754_s26 + $0x42] sm:$0x3f] %vm269_vm0, %v260_v12 }
  0x8c   : > { %331 = vst.msk [vmem:[%s754_s26 + $0x3c] sm:$0x30] %vm326_vm1, %v260_v12 }
  0x8d   : > { %352 = vst.msk [vmem:[%s754_s26 + $0x48] sm:$0x1] %vm347_vm2, %v260_v12 }
  0x92   : > { %v262_v13 = vpop.permute.xlu2 %261 }
  0x93   : > { %275 = vst.msk [vmem:[%s754_s26 + $0x52] sm:$0x3f] %vm269_vm0, %v262_v13 }
  0x94   : > { %332 = vst.msk [vmem:[%s754_s26 + $0x4c] sm:$0x30] %vm326_vm1, %v262_v13 }
  0x95   : > { %353 = vst.msk [vmem:[%s754_s26 + $0x58] sm:$0x1] %vm347_vm2, %v262_v13 }
  0x9a   : > { %v281_v16 = vpop.permute.xlu2 %280 }
  0xa1   : > { %v256_v14 = vpop.permute.xlu1 %255  ;;  %v252_v15 = vpop.permute.xlu0 %251 }
  0xa2   : > { %272 = vst.msk [vmem:[%s754_s26 + $0x22] sm:$0x3f] %vm269_vm0, %v256_v14  ;;  %v287_v19 = vpop.permute.xlu2 %286 }
  0xa3   : > { %329 = vst.msk [vmem:[%s754_s26 + $0x1c] sm:$0x30] %vm326_vm1, %v256_v14 }
  0xa4   : > { %350 = vst.msk [vmem:[%s754_s26 + $0x28] sm:$0x1] %vm347_vm2, %v256_v14 }
  0xa5   : > { %270 = vst.msk [vmem:[%s754_s26 + $0x2] sm:$0x3f] %vm269_vm0, %v252_v15 }
  0xa6   : > { %327 = vst.msk [vmem:[%s754_s26 - $0x4] sm:$0x30] %vm326_vm1, %v252_v15 }
  0xa7   : > { %348 = vst.msk [vmem:[%s754_s26 + $0x8] sm:$0x1] %vm347_vm2, %v252_v15 }
  0xa8   : > { %297 = vst.msk [vmem:[%s754_s26 + $0x22] sm:$0x3f] %vm294_vm3, %v281_v16 }
  0xa9   : > { %v258_v17 = vpop.permute.xlu1 %257  ;;  %v254_v18 = vpop.permute.xlu0 %253  ;;  %336 = vst.msk [vmem:[%s754_s26 + $0x1c] sm:$0x30] %vm333_vm4, %v281_v16 }
  0xaa   : > { %273 = vst.msk [vmem:[%s754_s26 + $0x32] sm:$0x3f] %vm269_vm0, %v258_v17  ;;  %v306_v24 = vpop.permute.xlu2 %305 }
  0xab   : > { %330 = vst.msk [vmem:[%s754_s26 + $0x2c] sm:$0x30] %vm326_vm1, %v258_v17 }
  0xac   : > { %351 = vst.msk [vmem:[%s754_s26 + $0x38] sm:$0x1] %vm347_vm2, %v258_v17 }
  0xad   : > { %271 = vst.msk [vmem:[%s754_s26 + $0x12] sm:$0x3f] %vm269_vm0, %v254_v18 }
  0xae   : > { %328 = vst.msk [vmem:[%s754_s26 + $0xc] sm:$0x30] %vm326_vm1, %v254_v18 }
  0xaf   : > { %349 = vst.msk [vmem:[%s754_s26 + $0x18] sm:$0x1] %vm347_vm2, %v254_v18 }
  0xb0   : > { %357 = vst.msk [vmem:[%s754_s26 + $0x28] sm:$0x1] %vm354_vm5, %v281_v16 }
  0xb1   : > { %v279_v20 = vpop.permute.xlu1 %278  ;;  %v277_v21 = vpop.permute.xlu0 %276  ;;  %300 = vst.msk [vmem:[%s754_s26 + $0x52] sm:$0x3f] %vm294_vm3, %v287_v19 }
  0xb2   : > { %296 = vst.msk [vmem:[%s754_s26 + $0x12] sm:$0x3f] %vm294_vm3, %v279_v20  ;;  %v312_v27 = vpop.permute.xlu2 %311 }
  0xb3   : > { %335 = vst.msk [vmem:[%s754_s26 + $0xc] sm:$0x30] %vm333_vm4, %v279_v20 }
  0xb4   : > { %356 = vst.msk [vmem:[%s754_s26 + $0x18] sm:$0x1] %vm354_vm5, %v279_v20 }
  0xb5   : > { %295 = vst.msk [vmem:[%s754_s26 + $0x2] sm:$0x3f] %vm294_vm3, %v277_v21 }
  0xb6   : > { %334 = vst.msk [vmem:[%s754_s26 - $0x4] sm:$0x30] %vm333_vm4, %v277_v21 }
  0xb7   : > { %355 = vst.msk [vmem:[%s754_s26 + $0x8] sm:$0x1] %vm354_vm5, %v277_v21 }
  0xb8   : > { %339 = vst.msk [vmem:[%s754_s26 + $0x4c] sm:$0x30] %vm333_vm4, %v287_v19 }
  0xb9   : > { %360 = vst.msk [vmem:[%s754_s26 + $0x58] sm:$0x1] %vm354_vm5, %v287_v19  ;;  %v285_v22 = vpop.permute.xlu1 %284  ;;  %v283_v23 = vpop.permute.xlu0 %282 }
  0xba   : > { %299 = vst.msk [vmem:[%s754_s26 + $0x42] sm:$0x3f] %vm294_vm3, %v285_v22 }
  0xbb   : > { %338 = vst.msk [vmem:[%s754_s26 + $0x3c] sm:$0x30] %vm333_vm4, %v285_v22 }
  0xbc   : > { %359 = vst.msk [vmem:[%s754_s26 + $0x48] sm:$0x1] %vm354_vm5, %v285_v22 }
  0xbd   : > { %298 = vst.msk [vmem:[%s754_s26 + $0x32] sm:$0x3f] %vm294_vm3, %v283_v23 }
  0xbe   : > { %337 = vst.msk [vmem:[%s754_s26 + $0x2c] sm:$0x30] %vm333_vm4, %v283_v23 }
  0xbf   : > { %358 = vst.msk [vmem:[%s754_s26 + $0x38] sm:$0x1] %vm354_vm5, %v283_v23 }
  0xc0   : > { %322 = vst.msk [vmem:[%s754_s26 + $0x22] sm:$0x3f] %vm319_vm6, %v306_v24 }
  0xc1   : > { %343 = vst.msk [vmem:[%s754_s26 + $0x1c] sm:$0x30] %vm340_vm7, %v306_v24  ;;  %v304_v25 = vpop.permute.xlu1 %303  ;;  %v302_v26 = vpop.permute.xlu0 %301 }
  0xc2   : > { %364 = vst.msk [vmem:[%s754_s26 + $0x28] sm:$0x1] %vm361_vm8, %v306_v24 }
  0xc3   : > { %321 = vst.msk [vmem:[%s754_s26 + $0x12] sm:$0x3f] %vm319_vm6, %v304_v25 }
  0xc4   : > { %342 = vst.msk [vmem:[%s754_s26 + $0xc] sm:$0x30] %vm340_vm7, %v304_v25 }
  0xc5   : > { %363 = vst.msk [vmem:[%s754_s26 + $0x18] sm:$0x1] %vm361_vm8, %v304_v25 }
  0xc6   : > { %320 = vst.msk [vmem:[%s754_s26 + $0x2] sm:$0x3f] %vm319_vm6, %v302_v26 }
  0xc7   : > { %341 = vst.msk [vmem:[%s754_s26 - $0x4] sm:$0x30] %vm340_vm7, %v302_v26 }
  0xc8   : > { %362 = vst.msk [vmem:[%s754_s26 + $0x8] sm:$0x1] %vm361_vm8, %v302_v26  ;;  %v439_v34 = vld [vmem:[%s754_s26 + $0x20] sm:$0xff] (%p736_p10) }
  0xc9   : > { %325 = vst.msk [vmem:[%s754_s26 + $0x52] sm:$0x3f] %vm319_vm6, %v312_v27  ;;  %v310_v28 = vpop.permute.xlu1 %309  ;;  %v308_v29 = vpop.permute.xlu0 %307  ;;  %v441_v35 = vld [vmem:[%s754_s26 + $0x28] sm:$0xff] (%p736_p10) }
  0xca   : > { %346 = vst.msk [vmem:[%s754_s26 + $0x4c] sm:$0x30] %vm340_vm7, %v312_v27 }
  0xcb   : > { %367 = vst.msk [vmem:[%s754_s26 + $0x58] sm:$0x1] %vm361_vm8, %v312_v27  ;;  %v435_v32 = vld [vmem:[%s754_s26 + $0x10] sm:$0xff] (%p736_p10) }
  0xcc   : > { %324 = vst.msk [vmem:[%s754_s26 + $0x42] sm:$0x3f] %vm319_vm6, %v310_v28  ;;  %v437_v33 = vld [vmem:[%s754_s26 + $0x18] sm:$0xff] (%p736_p10) }
  0xcd   : > { %345 = vst.msk [vmem:[%s754_s26 + $0x3c] sm:$0x30] %vm340_vm7, %v310_v28  ;;  %374 = sbr.rel (!%p736_p10) target bundleno = 222 (0xde), region = 66 }
  0xce   : > { %366 = vst.msk [vmem:[%s754_s26 + $0x48] sm:$0x1] %vm361_vm8, %v310_v28  ;;  %v431_v30 = vld [vmem:[%s754_s26] sm:$0xff] (%p736_p10) }
  0xcf   : > { %323 = vst.msk [vmem:[%s754_s26 + $0x32] sm:$0x3f] %vm319_vm6, %v308_v29  ;;  %v433_v31 = vld [vmem:[%s754_s26 + $0x8] sm:$0xff] (%p736_p10) }
  0xd0   : > { %344 = vst.msk [vmem:[%s754_s26 + $0x2c] sm:$0x30] %vm340_vm7, %v308_v29 }
  0xd1   : > { %365 = vst.msk [vmem:[%s754_s26 + $0x38] sm:$0x1] %vm361_vm8, %v308_v29  ;;  %v451_v40 = vld [vmem:[%s754_s26 + $0x50] sm:$0xff] (%p736_p10) }
  0xd2   : > { %432 = vst [vmem:[%s380_s30] sm:$0xff] %v431_v30  ;;  %v453_v41 = vld [vmem:[%s754_s26 + $0x58] sm:$0xff] }
  0xd3   : > { %434 = vst [vmem:[%s380_s30 + $0x8] sm:$0xff] %v433_v31 }
  0xd4   : > { %436 = vst [vmem:[%s380_s30 + $0x60] sm:$0xff] %v435_v32  ;;  %v447_v38 = vld [vmem:[%s754_s26 + $0x40] sm:$0xff] }
  0xd5   : > { %438 = vst [vmem:[%s380_s30 + $0x68] sm:$0xff] %v437_v33  ;;  %v449_v39 = vld [vmem:[%s754_s26 + $0x48] sm:$0xff] }
  0xd6   : > { %440 = vst [vmem:[%s380_s30 + $0xc0] sm:$0xff] %v439_v34 }
  0xd7   : > { %v443_v36 = vld [vmem:[%s754_s26 + $0x30] sm:$0xff]  ;;  %442 = vst [vmem:[%s380_s30 + $0xc8] sm:$0xff] %v441_v35 }
  0xd8   : > { %v445_v37 = vld [vmem:[%s754_s26 + $0x38] sm:$0xff]  ;;  %444 = vst [vmem:[%s380_s30 + $0x120] sm:$0xff] %v443_v36 }
  0xd9   : > { %446 = vst [vmem:[%s380_s30 + $0x128] sm:$0xff] %v445_v37 }
  0xda   : > { %448 = vst [vmem:[%s380_s30 + $0x180] sm:$0xff] %v447_v38 }
  0xdb   : > { %450 = vst [vmem:[%s380_s30 + $0x188] sm:$0xff] %v449_v39 }
  0xdc   : > { %452 = vst [vmem:[%s380_s30 + $0x1e0] sm:$0xff] %v451_v40 }
  0xdd   : > { %454 = vst [vmem:[%s380_s30 + $0x1e8] sm:$0xff] %v453_v41 }
  0xde PF: > { %s11_s12 = sadd.s32 1, %s664_s12   ;;  %s907_s6 = smov %s644_s7 }
  0xdf   : > { %p8_p1 = scmp.ge.s32.totalorder %s11_s12, 8   ;;  %s908_s7 = smov %s731_s28 }
  0xe0   : > { %s909_s8 = smov %s652_s9  ;;  %s910_s9 = smov %s741_s3 }
  0xe1   : > { %s911_s10 = smov %s660_s11  ;;  %s912_s11 = smov %s914_s13 }
  0xe2   :  { %10 = sbr.rel (!%p8_p1) target bundleno = 4 (0x4), region = 135 }

</bundles_post_ra>
